<compile_context>
chip_gen: v7x
topology: tpu7x:2x2x1
jax: 0.10.0
libtpu: 0.0.40
codegen_flags: <defaults>
</compile_context>

<pallas_src>
import functools

import jax
import jax.numpy as jnp
from jax.experimental import pallas as pl
from jax.experimental.pallas import tpu as pltpu

NUM_CLASSES = 10
IN_FEATURES = 4096
LANE = 128  # TPU lane width: pad the class dim to this for dense vregs / unmasked stores


def _classifier_kernel(x_ref, w_ref, b_ref, o_ref):
    # ReLU on the VPU in the input dtype (f32 or bf16), then cast to the MXU compute
    # dtype (the bf16 weight dtype). If x is already bf16 the cast is a no-op.
    x = jnp.maximum(x_ref[...], 0).astype(w_ref.dtype)
    # Canonical [M, K] x [K, N] matmul; weight is already (4096, c_pad), lane-dense in N.
    acc = jnp.dot(x, w_ref[...], preferred_element_type=jnp.float32)
    o_ref[...] = (acc + b_ref[...]).astype(o_ref.dtype)


def prepare_params(weight, bias, *, compute_dtype=jnp.bfloat16):
    """One-time parameter prep (do this at model init, NOT in the per-step hot path).

    weight: (num_classes, 4096) f32 (PyTorch nn.Linear layout)
    bias:   (num_classes,)      f32
    returns (w_pad, b_pad):
        w_pad: (4096, c_pad) compute_dtype   -- transposed to [K, N], class dim zero-padded to 128
        b_pad: (1, c_pad)    f32
    """
    C, F = weight.shape
    c_pad = ((C + LANE - 1) // LANE) * LANE
    w_pad = (
        jnp.zeros((F, c_pad), compute_dtype)
        .at[:, :C]
        .set(weight.T.astype(compute_dtype))
    )
    b_pad = jnp.zeros((1, c_pad), jnp.float32).at[0, :C].set(bias.astype(jnp.float32))
    return w_pad, b_pad


def _round_up8(n):
    return max(8, ((n + 7) // 8) * 8)


def _choose_tm(batch, x_itemsize):
    """Batch-tile rows.

    * f32 x: cap at 512 rows (2 x 8 MiB double-buffered x tiles + weight + out stays
      well inside v7x's 64 MiB VMEM; also >= ~85%-of-roofline territory on v5e/v6e).
    * bf16 x: cap at 1024 rows (same 2 x 8 MiB footprint, halves grid-step overhead).
    * For B >= 16, pick tm ~= cdiv(B, 2) so the grid has >= 2 steps and
      dimension_semantics=("parallel",) can shard the batch across v7x's 2 TCs.
    """
    cap = 1024 if x_itemsize <= 2 else 512
    if batch < 16:
        return _round_up8(batch)
    return min(cap, _round_up8(pl.cdiv(batch, 2)))


@functools.partial(jax.jit, static_argnames=("num_classes", "out_dtype"))
def alex_classifier(x, w_pad, b_pad, *, num_classes=NUM_CLASSES, out_dtype=None):
    """Forward pass: Linear(ReLU(x)).

    x:     (B, 4096) f32 or bf16 (stream bf16 from the upstream layer when possible)
    w_pad: (4096, c_pad) bf16 from prepare_params
    b_pad: (1, c_pad)    f32  from prepare_params
    returns (B, num_classes) in out_dtype (defaults to x.dtype)
    """
    B, F = x.shape
    c_pad = w_pad.shape[1]
    out_dtype = jnp.dtype(out_dtype) if out_dtype is not None else jnp.dtype(x.dtype)

    tm = _choose_tm(B, jnp.dtype(x.dtype).itemsize)
    grid = (pl.cdiv(B, tm),)  # ragged last block handled by Pallas; no wrapper jnp.pad

    out = pl.pallas_call(
        _classifier_kernel,
        out_shape=jax.ShapeDtypeStruct((B, c_pad), out_dtype),
        grid_spec=pltpu.PrefetchScalarGridSpec(
            num_scalar_prefetch=0,
            grid=grid,
            in_specs=[
                pl.BlockSpec((tm, F), lambda i: (i, 0)),       # x: streamed over batch
                pl.BlockSpec((F, c_pad), lambda i: (0, 0)),    # weight: grid-invariant, resident
                pl.BlockSpec((1, c_pad), lambda i: (0, 0)),    # bias: grid-invariant, resident
            ],
            out_specs=pl.BlockSpec((tm, c_pad), lambda i: (i, 0)),
        ),
        compiler_params=pltpu.CompilerParams(
            dimension_semantics=("parallel",),  # shards batch across v7x's 2 TCs; harmless elsewhere
            vmem_limit_bytes=48 * 1024 * 1024,
        ),
        cost_estimate=pl.CostEstimate(
            flops=2 * B * F * c_pad,
            transcendentals=0,
            bytes_accessed=(
                B * F * jnp.dtype(x.dtype).itemsize
                + F * c_pad * jnp.dtype(w_pad.dtype).itemsize
                + c_pad * jnp.dtype(b_pad.dtype).itemsize
                + B * c_pad * out_dtype.itemsize
            ),
        ),
    )(x, w_pad, b_pad)

    # Slice the padded class columns back off outside the kernel (cheap XLA slice).
    return out[:, :num_classes]


if __name__ == "__main__":
    key = jax.random.PRNGKey(0)
    kx, kw, kb, kx2 = jax.random.split(key, 4)

    # Deterministic synthetic params (mirrors nn.Linear's uniform init bound).
    bound = 1.0 / (IN_FEATURES ** 0.5)
    weight = jax.random.uniform(
        kw, (NUM_CLASSES, IN_FEATURES), dtype=jnp.float32, minval=-bound, maxval=bound
    )
    bias = jax.random.uniform(
        kb, (NUM_CLASSES,), dtype=jnp.float32, minval=-bound, maxval=bound
    )

    # One-time param prep (transpose to (4096, 128), pad class dim, cast weight to bf16).
    w_pad, b_padded = prepare_params(weight, bias)

    # --- Case 1: small f32 batch, single grid step ---------------------------------
    B1 = 8
    x1 = jax.random.normal(kx, (B1, IN_FEATURES), dtype=jnp.float32)
    out1 = jax.block_until_ready(alex_classifier(x1, w_pad, b_padded))
    ref1 = jnp.maximum(x1, 0.0) @ weight.T + bias
    assert out1.shape == (B1, NUM_CLASSES)
    assert jnp.allclose(out1, ref1, atol=2e-2, rtol=2e-2), float(
        jnp.max(jnp.abs(out1 - ref1))
    )

    # --- Case 2: non-tile-aligned batch, 2-step grid, ragged last block, no jnp.pad -
    B2 = 20
    x2 = jax.random.normal(kx2, (B2, IN_FEATURES), dtype=jnp.float32)
    out2 = jax.block_until_ready(alex_classifier(x2, w_pad, b_padded))
    ref2 = jnp.maximum(x2, 0.0) @ weight.T + bias
    assert out2.shape == (B2, NUM_CLASSES)
    assert jnp.allclose(out2, ref2, atol=2e-2, rtol=2e-2), float(
        jnp.max(jnp.abs(out2 - ref2))
    )

    # --- Case 3: bf16 activations streamed straight into the kernel -----------------
    # (Simulates an upstream layer that emits bf16; no cast inside the wrapper.)
    x3 = x2.astype(jnp.bfloat16)
    out3 = jax.block_until_ready(
        alex_classifier(x3, w_pad, b_padded, out_dtype=jnp.float32)
    )
    ref3 = jnp.maximum(x3.astype(jnp.float32), 0.0) @ weight.T + bias
    assert out3.shape == (B2, NUM_CLASSES)
    assert jnp.allclose(out3, ref3, atol=3e-2, rtol=3e-2), float(
        jnp.max(jnp.abs(out3 - ref3))
    )

    print("KERNEL_OK")
</pallas_src>

<mosaic_0001>
module attributes {stable_mosaic.version = 11 : i64} {
  func.func @_classifier_kernel(%arg0: i32, %arg1: memref<8x4096xf32, #tpu.memory_space<vmem>>, %arg2: memref<4096x128xbf16, #tpu.memory_space<vmem>>, %arg3: memref<1x128xf32, #tpu.memory_space<vmem>>, %arg4: memref<8x128xf32, #tpu.memory_space<vmem>>) attributes {dimension_semantics = [#tpu.dimension_semantics<parallel>], iteration_bounds = array<i64: 1>, scalar_prefetch = 0 : i64, scratch_operands = 0 : i64, tpu.core_type = #tpu.core_type<tc>, window_params = [{transform_indices = @transform_0, window_bounds = array<i64: 8, 4096>}, {pipeline_mode = #tpu.pipeline_mode<synchronous>, transform_indices = @transform_1, window_bounds = array<i64: 4096, 128>}, {pipeline_mode = #tpu.pipeline_mode<synchronous>, transform_indices = @transform_2, window_bounds = array<i64: 1, 128>}, {transform_indices = @transform_3, window_bounds = array<i64: 8, 128>}]} {
    %c0 = arith.constant 0 : index
    %c0_0 = arith.constant 0 : index
    %0 = vector.load %arg1[%c0, %c0_0] : memref<8x4096xf32, #tpu.memory_space<vmem>>, vector<8x4096xf32>
    %cst = arith.constant 0.000000e+00 : f32
    %1 = vector.broadcast %cst : f32 to vector<8x4096xf32>
    %2 = arith.maximumf %0, %1 : vector<8x4096xf32>
    %3 = arith.truncf %2 : vector<8x4096xf32> to vector<8x4096xbf16>
    %c0_1 = arith.constant 0 : index
    %c0_2 = arith.constant 0 : index
    %4 = vector.load %arg2[%c0_1, %c0_2] : memref<4096x128xbf16, #tpu.memory_space<vmem>>, vector<4096x128xbf16>
    %cst_3 = arith.constant dense<0.000000e+00> : vector<8x128xf32>
    %5 = tpu.matmul %3, %4, %cst_3 {dimension_numbers = #tpu.dot_dimension_numbers<[1], [0], [0], [1], [0, 0, 1, 1], [], []>} : vector<8x4096xbf16>, vector<4096x128xbf16>, vector<8x128xf32> -> vector<8x128xf32>
    %c0_4 = arith.constant 0 : index
    %c0_5 = arith.constant 0 : index
    %6 = vector.load %arg3[%c0_4, %c0_5] : memref<1x128xf32, #tpu.memory_space<vmem>>, vector<1x128xf32>
    %7 = vector.broadcast %6 : vector<1x128xf32> to vector<8x128xf32>
    %8 = arith.addf %5, %7 : vector<8x128xf32>
    %c0_6 = arith.constant 0 : index
    %c0_7 = arith.constant 0 : index
    %9 = vector.load %arg4[%c0_6, %c0_7] : memref<8x128xf32, #tpu.memory_space<vmem>>, vector<8x128xf32>
    tpu.vector_store %arg4[%c0_6, %c0_7], %8 {strides = array<i32>} : memref<8x128xf32, #tpu.memory_space<vmem>>, vector<8x128xf32>,
    return
  }
  func.func @transform_0(%arg0: i32) -> (i32, i32) {
    %c0_i32 = arith.constant 0 : i32
    %c0_i32_0 = arith.constant 0 : i32
    return %arg0, %c0_i32 : i32, i32
  }
  func.func @transform_1(%arg0: i32) -> (i32, i32) {
    %c0_i32 = arith.constant 0 : i32
    %c0_i32_0 = arith.constant 0 : i32
    %c0_i32_1 = arith.constant 0 : i32
    return %c0_i32, %c0_i32_0 : i32, i32
  }
  func.func @transform_2(%arg0: i32) -> (i32, i32) {
    %c0_i32 = arith.constant 0 : i32
    %c0_i32_0 = arith.constant 0 : i32
    %c0_i32_1 = arith.constant 0 : i32
    return %c0_i32, %c0_i32_0 : i32, i32
  }
  func.func @transform_3(%arg0: i32) -> (i32, i32) {
    %c0_i32 = arith.constant 0 : i32
    %c0_i32_0 = arith.constant 0 : i32
    return %arg0, %c0_i32 : i32, i32
  }
}

</mosaic_0001>

<bundles_post_ra>
// kernel: alex_classifier.1
= control target key start
LH: loop header
LB: loop body
LE: loop exit
PB: predicated region body
PF: predicated region fallthrough
CT: control target
= control target key end

     0   :  { %8 = vsyncpa [#allocation3], 0  ;;  %s3863_s0 = inlined_call_operand.hbm [shape: f32[8,4096], index: 0, kind: input, shape index: {}]   ;;  %s3864_s1 = inlined_call_operand.hbm [shape: bf16[4096,128], index: 1, kind: input, shape index: {}]   ;;  %s3865_s2 = inlined_call_operand.vmem [shape: f32[1,128], index: 2, kind: input, shape index: {}]   ;;  %s3866_s3 = inlined_call_operand.hbm [shape: f32[8,128], index: 3, kind: output, shape index: {}]  }
   0x1   :  { %9 = vsyncpa [#allocation6], 0 }
   0x2   :  { %10 = vsyncpa [#allocation4], 0  ;;  %s3792_s12 = smov [#allocation2]   ;;  %s3793_s14 = smov [#allocation5]  }
   0x3   :  { %s17_s13 = sshll.u32 %s3792_s12, 4  ;;  %s26_s15 = sshll.u32 %s3793_s14, 4  ;;  %s18_s13 = int_to_ptr.vmem [resolvable:$true] %s17_s13  ;;  %s3817_s15 = int_to_ptr.vmem [resolvable:$true] %s26_s15 }
   0x4   :  { %s3720_s18 = scalar_lea.hbm %s3863_s0, 4096 }
   0x5   :  { %p3721_p0 = scmp.ne.s32.totalorder %s3863_s0, %s3720_s18  ;;  %p3724_p1 = scmp.lt.u32.totalorder %s3720_s18, %s3863_s0 }
   0x7   :  { %p3726_p2 = pnand %p3724_p1, %p3721_p0 }
   0x9   :  { %3729 = shalt.err (!%p3726_p2)
}
   0xa   :  { %s3730_s23 = scalar_lea.vmem %s18_s13, 4096  ;;  %p3735_p4 = scmp.lt.s32.totalorder %s18_s13, %s18_s13 }
   0xb   :  { %p3731_p3 = scmp.ne.s32.totalorder %s18_s13, %s3730_s23  ;;  %p3736_p5 = scmp.lt.s32.totalorder %s3730_s23, %s3730_s23 }
   0xd   :  { %p3737_p6 = por %p3736_p5, %p3735_p4 }
   0xf   :  { %p3738_p7 = pnand %p3737_p6, %p3731_p3 }
  0x11   :  { %3741 = shalt.err (!%p3738_p7)
}
  0x12   :  { %20 = dma.hbm_to_vmem [thread:$0]  %s3863_s0, 4096, %s18_s13, [#allocation3]  }
  0x13   :  { %s3742_s28 = scalar_lea.hbm %s3864_s1, 32768 }
  0x14   :  { %p3743_p8 = scmp.ne.s32.totalorder %s3864_s1, %s3742_s28  ;;  %p3746_p9 = scmp.lt.u32.totalorder %s3742_s28, %s3864_s1 }
  0x16   :  { %p3748_p10 = pnand %p3746_p9, %p3743_p8 }
  0x18   :  { %3751 = shalt.err (!%p3748_p10)
}
  0x19   :  { %s3752_s6 = scalar_lea.vmem %s3817_s15, 32768  ;;  %p3757_p12 = scmp.lt.s32.totalorder %s3817_s15, %s3817_s15 }
  0x1a   :  { %p3753_p11 = scmp.ne.s32.totalorder %s3817_s15, %s3752_s6  ;;  %p3758_p13 = scmp.lt.s32.totalorder %s3752_s6, %s3752_s6 }
  0x1c   :  { %p3759_p0 = por %p3758_p13, %p3757_p12 }
  0x1e   :  { %p3760_p1 = pnand %p3759_p0, %p3753_p11 }
  0x20   :  { %3763 = shalt.err (!%p3760_p1)
}
  0x21   :  { %s3794_s0 = smov 64   ;;  %s3795_s7 = smov 4  }
  0x22   :  { %32 = dma.hbm_to_vmem [thread:$0]  %s3864_s1, 32768, %s3817_s15, [#allocation6], %s3794_s0, %s3794_s0, %s3795_s7  }
  0x23   :  { %3786 = dma.done.wait [#allocation3], 4096  }
  0x24   :  { %3787 = vsyncadd [#allocation3], 4294963200 }
  0x25   :  { %3788 = dma.done.wait [#allocation6], 32768  }
  0x26   :  { %3789 = vsyncadd [#allocation6], 4294934528  ;;  %v3464_v0 = vld [vmem:[#allocation5 + $0x40] sm:$0xff]   ;;  %v3468_v4 = vld [vmem:[#allocation5 + $0x48] sm:$0xff]  }
  0x27   :  { %v3465_v1 = vld [vmem:[#allocation5 + $0xc0] sm:$0xff]   ;;  %3107 = vmatprep.subr.bf16.mxu0 %v3464_v0  ;;  %v3469_v5 = vld [vmem:[#allocation5 + $0xc8] sm:$0xff]   ;;  %v3472_v8 = vld [vmem:[#allocation5 + $0x50] sm:$0xff]  }
  0x28   :  { %v3466_v2 = vld [vmem:[#allocation5] sm:$0xff]   ;;  %3129 = vmatprep.subr.bf16.mxu1 %v3465_v1  ;;  %v3470_v6 = vld [vmem:[#allocation5 + $0x8] sm:$0xff]   ;;  %v3473_v9 = vld [vmem:[#allocation5 + $0xd0] sm:$0xff]  }
  0x29   :  { %v3467_v3 = vld [vmem:[#allocation5 + $0x80] sm:$0xff]   ;;  %3108 = vmatpush3.bf16.msra.mxu0 %v3466_v2  ;;  %v3471_v7 = vld [vmem:[#allocation5 + $0x88] sm:$0xff]   ;;  %v3474_v10 = vld [vmem:[#allocation5 + $0x10] sm:$0xff]  }
  0x2a   :  { %3130 = vmatpush3.bf16.msra.mxu1 %v3467_v3  ;;  %3109 = vmatprep.subr.bf16.mxu0 %v3468_v4  ;;  %v3475_v11 = vld [vmem:[#allocation5 + $0x90] sm:$0xff]   ;;  %v3476_v12 = vld [vmem:[#allocation5 + $0x58] sm:$0xff]   ;;  %v3480_v16 = vld [vmem:[#allocation5 + $0x60] sm:$0xff]  }
  0x2b   :  { %3131 = vmatprep.subr.bf16.mxu1 %v3469_v5  ;;  %v3477_v13 = vld [vmem:[#allocation5 + $0xd8] sm:$0xff]   ;;  %v3481_v17 = vld [vmem:[#allocation5 + $0xe0] sm:$0xff]   ;;  %v3484_v20 = vld [vmem:[#allocation5 + $0x68] sm:$0xff]  }
  0x2c   :  { %v3478_v14 = vld [vmem:[#allocation5 + $0x18] sm:$0xff]   ;;  %v3482_v18 = vld [vmem:[#allocation5 + $0x20] sm:$0xff]   ;;  %v3485_v21 = vld [vmem:[#allocation5 + $0xe8] sm:$0xff]  }
  0x2d   :  { %3110 = vmatpush3.bf16.msra.mxu0 %v3470_v6  ;;  %v3479_v15 = vld [vmem:[#allocation5 + $0x98] sm:$0xff]   ;;  %v3483_v19 = vld [vmem:[#allocation5 + $0xa0] sm:$0xff]   ;;  %v3486_v22 = vld [vmem:[#allocation5 + $0x28] sm:$0xff]  }
  0x2e   :  { %3132 = vmatpush3.bf16.msra.mxu1 %v3471_v7  ;;  %3111 = vmatprep.subr.bf16.mxu0 %v3472_v8  ;;  %v3487_v23 = vld [vmem:[#allocation5 + $0xa8] sm:$0xff]   ;;  %v3488_v24 = vld [vmem:[#allocation5 + $0x70] sm:$0xff]   ;;  %v3492_v28 = vld [vmem:[#allocation5 + $0x78] sm:$0xff]  }
  0x2f   :  { %3133 = vmatprep.subr.bf16.mxu1 %v3473_v9  ;;  %v3489_v25 = vld [vmem:[#allocation5 + $0xf0] sm:$0xff]   ;;  %v3493_v29 = vld [vmem:[#allocation5 + $0xf8] sm:$0xff]   ;;  %v43_v32 = vld [vmem:[#allocation2 + $0x8] sm:$0xff] }
  0x30   :  { %v3490_v26 = vld [vmem:[#allocation5 + $0x30] sm:$0xff]   ;;  %v3494_v30 = vld [vmem:[#allocation5 + $0x38] sm:$0xff]   ;;  %v42_v34 = vld [vmem:[#allocation2] sm:$0xff]  ;;  %v75_v35 = vmax.f32 %v43_v32, 0.0 }
  0x31   :  { %3112 = vmatpush3.bf16.msra.mxu0 %v3474_v10  ;;  %v3491_v27 = vld [vmem:[#allocation5 + $0xb0] sm:$0xff]   ;;  %v3495_v31 = vld [vmem:[#allocation5 + $0xb8] sm:$0xff]   ;;  %v74_v37 = vmax.f32 %v42_v34, 0.0  ;;  %v3496_v40 = vld [vmem:[#allocation5 + $0x140] sm:$0xff]  }
  0x32   :  { %3134 = vmatpush3.bf16.msra.mxu1 %v3475_v11  ;;  %3113 = vmatprep.subr.bf16.mxu0 %v3476_v12  ;;  %v45_v33 = vld [vmem:[#allocation2 + $0x18] sm:$0xff]  ;;  %v44_v38 = vld [vmem:[#allocation2 + $0x10] sm:$0xff]  ;;  %v107_v41 = vpack.c.bf16 %v75_v35, %v75_v35  ;;  %v3497_v44 = vld [vmem:[#allocation5 + $0x1c0] sm:$0xff]  }
  0x33   :  { %3135 = vmatprep.subr.bf16.mxu1 %v3477_v13  ;;  %v77_v36 = vmax.f32 %v45_v33, 0.0  ;;  %v76_v39 = vmax.f32 %v44_v38, 0.0  ;;  %v106_v43 = vpack.c.bf16 %v74_v37, %v74_v37  ;;  %v3498_v46 = vld [vmem:[#allocation5 + $0x100] sm:$0xff]   ;;  %v3500_v48 = vld [vmem:[#allocation5 + $0x148] sm:$0xff]   ;;  %v3504_v52 = vld [vmem:[#allocation5 + $0x150] sm:$0xff]  }
  0x34   :  { %2225 = vmatprep.mubr.bf16.mxu0 %v107_v41  ;;  %v3499_v47 = vld [vmem:[#allocation5 + $0x180] sm:$0xff]   ;;  %v3501_v49 = vld [vmem:[#allocation5 + $0x1c8] sm:$0xff]   ;;  %v3505_v53 = vld [vmem:[#allocation5 + $0x1d0] sm:$0xff]  }
  0x35   :  { %3114 = vmatpush3.bf16.msra.mxu0 %v3478_v14  ;;  %v109_v42 = vpack.c.bf16 %v77_v36, %v77_v36  ;;  %v108_v45 = vpack.c.bf16 %v76_v39, %v76_v39  ;;  %v3502_v50 = vld [vmem:[#allocation5 + $0x108] sm:$0xff]   ;;  %v3506_v54 = vld [vmem:[#allocation5 + $0x110] sm:$0xff]   ;;  %v3508_v56 = vld [vmem:[#allocation5 + $0x158] sm:$0xff]  }
  0x36   :  { %3136 = vmatpush3.bf16.msra.mxu1 %v3479_v15  ;;  %3115 = vmatprep.subr.bf16.mxu0 %v3480_v16  ;;  %v3503_v51 = vld [vmem:[#allocation5 + $0x188] sm:$0xff]   ;;  %v3507_v55 = vld [vmem:[#allocation5 + $0x190] sm:$0xff]   ;;  %v3509_v57 = vld [vmem:[#allocation5 + $0x1d8] sm:$0xff]  }
  0x37   :  { %3137 = vmatprep.subr.bf16.mxu1 %v3481_v17  ;;  %2265 = vmatprep.mubr.bf16.mxu1 %v109_v42  ;;  %v3510_v58 = vld [vmem:[#allocation5 + $0x118] sm:$0xff]   ;;  %v3512_v60 = vld [vmem:[#allocation5 + $0x160] sm:$0xff]   ;;  %v3516_v0 = vld [vmem:[#allocation5 + $0x168] sm:$0xff]  }
  0x38   :  { %v3511_v59 = vld [vmem:[#allocation5 + $0x198] sm:$0xff]   ;;  %v3513_v61 = vld [vmem:[#allocation5 + $0x1e0] sm:$0xff]   ;;  %v3517_v1 = vld [vmem:[#allocation5 + $0x1e8] sm:$0xff]  }
  0x39   :  { %3116 = vmatpush3.bf16.msra.mxu0 %v3482_v18  ;;  %v3514_v62 = vld [vmem:[#allocation5 + $0x120] sm:$0xff]   ;;  %v3518_v2 = vld [vmem:[#allocation5 + $0x128] sm:$0xff]   ;;  %v3520_v4 = vld [vmem:[#allocation5 + $0x170] sm:$0xff]  }
  0x3a   :  { %3138 = vmatpush3.bf16.msra.mxu1 %v3483_v19  ;;  %3117 = vmatprep.subr.bf16.mxu0 %v3484_v20  ;;  %v3515_v63 = vld [vmem:[#allocation5 + $0x1a0] sm:$0xff]   ;;  %v3519_v3 = vld [vmem:[#allocation5 + $0x1a8] sm:$0xff]   ;;  %v3521_v5 = vld [vmem:[#allocation5 + $0x1f0] sm:$0xff]  }
  0x3b   :  { %3139 = vmatprep.subr.bf16.mxu1 %v3485_v21  ;;  %v3522_v6 = vld [vmem:[#allocation5 + $0x130] sm:$0xff]   ;;  %v3524_v8 = vld [vmem:[#allocation5 + $0x178] sm:$0xff]   ;;  %v47_v12 = vld [vmem:[#allocation2 + $0x28] sm:$0xff] }
  0x3c   :  { %v3523_v7 = vld [vmem:[#allocation5 + $0x1b0] sm:$0xff]   ;;  %v3525_v9 = vld [vmem:[#allocation5 + $0x1f8] sm:$0xff]   ;;  %v79_v13 = vmax.f32 %v47_v12, 0.0  ;;  %v46_v15 = vld [vmem:[#allocation2 + $0x20] sm:$0xff] }
  0x3d   :  { %3118 = vmatpush3.bf16.msra.mxu0 %v3486_v22  ;;  %v3526_v10 = vld [vmem:[#allocation5 + $0x138] sm:$0xff]   ;;  %v48_v16 = vld [vmem:[#allocation2 + $0x30] sm:$0xff]  ;;  %v78_v18 = vmax.f32 %v46_v15, 0.0  ;;  %v3528_v20 = vld [vmem:[#allocation5 + $0x240] sm:$0xff]  }
  0x3e   :  { %3140 = vmatpush3.bf16.msra.mxu1 %v3487_v23  ;;  %3119 = vmatprep.subr.bf16.mxu0 %v3488_v24  ;;  %v3527_v11 = vld [vmem:[#allocation5 + $0x1b8] sm:$0xff]   ;;  %v80_v19 = vmax.f32 %v48_v16, 0.0  ;;  %v111_v21 = vpack.c.bf16 %v79_v13, %v79_v13  ;;  %v3536_v32 = vld [vmem:[#allocation5 + $0x250] sm:$0xff]   ;;  %v3545_v41 = vld [vmem:[#allocation5 + $0x2e0] sm:$0xff]  }
  0x3f   :  { %3141 = vmatprep.subr.bf16.mxu1 %v3489_v25  ;;  %v49_v14 = vld [vmem:[#allocation2 + $0x38] sm:$0xff]  ;;  %v110_v23 = vpack.c.bf16 %v78_v18, %v78_v18  ;;  %v3529_v25 = vld [vmem:[#allocation5 + $0x2c0] sm:$0xff]   ;;  %v3537_v33 = vld [vmem:[#allocation5 + $0x2d0] sm:$0xff]  }
  0x40   :  { %v81_v17 = vmax.f32 %v49_v14, 0.0  ;;  %v112_v24 = vpack.c.bf16 %v80_v19, %v80_v19  ;;  %v3538_v34 = vld [vmem:[#allocation5 + $0x210] sm:$0xff]   ;;  %v3540_v36 = vld [vmem:[#allocation5 + $0x258] sm:$0xff]   ;;  %v3546_v42 = vld [vmem:[#allocation5 + $0x220] sm:$0xff]  }
  0x41   :  { %3120 = vmatpush3.bf16.msra.mxu0 %v3490_v26  ;;  %v3530_v26 = vld [vmem:[#allocation5 + $0x200] sm:$0xff]   ;;  %v3539_v35 = vld [vmem:[#allocation5 + $0x290] sm:$0xff]   ;;  %v3541_v37 = vld [vmem:[#allocation5 + $0x2d8] sm:$0xff]  }
  0x42   :  { %3142 = vmatpush3.bf16.msra.mxu1 %v3491_v27  ;;  %3121 = vmatprep.subr.bf16.mxu0 %v3492_v28  ;;  %v113_v22 = vpack.c.bf16 %v81_v17, %v81_v17  ;;  %v3531_v27 = vld [vmem:[#allocation5 + $0x280] sm:$0xff]   ;;  %v3532_v28 = vld [vmem:[#allocation5 + $0x248] sm:$0xff]   ;;  %v3542_v38 = vld [vmem:[#allocation5 + $0x218] sm:$0xff]  }
  0x43   :  { %3143 = vmatprep.subr.bf16.mxu1 %v3493_v29  ;;  %v3533_v29 = vld [vmem:[#allocation5 + $0x2c8] sm:$0xff]   ;;  %v3543_v39 = vld [vmem:[#allocation5 + $0x298] sm:$0xff]   ;;  %v3568_v12 = vld [vmem:[#allocation5 + $0x350] sm:$0xff]  }
  0x44   :  { %v3569_v13 = vld [vmem:[#allocation5 + $0x3d0] sm:$0xff]   ;;  %v3572_v16 = vld [vmem:[#allocation5 + $0x358] sm:$0xff]  }
  0x45   :  { %3122 = vmatpush3.bf16.msra.mxu0 %v3494_v30  ;;  %v3534_v30 = vld [vmem:[#allocation5 + $0x208] sm:$0xff]   ;;  %v3570_v14 = vld [vmem:[#allocation5 + $0x310] sm:$0xff]   ;;  %v3573_v17 = vld [vmem:[#allocation5 + $0x3d8] sm:$0xff]  }
  0x46   :  { %3144 = vmatpush3.bf16.msra.mxu1 %v3495_v31  ;;  %3151 = vmatprep.subr.bf16.mxu0 %v3496_v40  ;;  %v3535_v31 = vld [vmem:[#allocation5 + $0x288] sm:$0xff]   ;;  %v3544_v40 = vld [vmem:[#allocation5 + $0x260] sm:$0xff]   ;;  %v3571_v15 = vld [vmem:[#allocation5 + $0x390] sm:$0xff]  }
  0x47   :  { %3173 = vmatprep.subr.bf16.mxu1 %v3497_v44  ;;  %v3548_v44 = vld [vmem:[#allocation5 + $0x268] sm:$0xff]   ;;  %v3574_v18 = vld [vmem:[#allocation5 + $0x318] sm:$0xff]  }
  0x48   :  { %2226 = vmatmul.mubr.bf16.vlgmr.msra.gmra.mrb[0].mxu0 %v106_v43  ;;  %v3547_v43 = vld [vmem:[#allocation5 + $0x2a0] sm:$0xff]   ;;  %v3575_v19 = vld [vmem:[#allocation5 + $0x398] sm:$0xff]  }
  0x49   :  { %2266 = vmatmul.mubr.bf16.vlgmr.msra.gmra.mrb[0].mxu1 %v108_v45  ;;  %3152 = vmatpush3.bf16.msra.mxu0 %v3498_v46  ;;  %v3549_v45 = vld [vmem:[#allocation5 + $0x2e8] sm:$0xff]  }
  0x4a   :  { %3174 = vmatpush3.bf16.msra.mxu1 %v3499_v47  ;;  %3153 = vmatprep.subr.bf16.mxu0 %v3500_v48  ;;  %v3550_v46 = vld [vmem:[#allocation5 + $0x228] sm:$0xff]   ;;  %v3552_v48 = vld [vmem:[#allocation5 + $0x270] sm:$0xff]  }
  0x4b   :  { %3175 = vmatprep.subr.bf16.mxu1 %v3501_v49  ;;  %2305 = vmatprep.mubr.bf16.mxu0 %v111_v21  ;;  %v3551_v47 = vld [vmem:[#allocation5 + $0x2a8] sm:$0xff]   ;;  %v3553_v49 = vld [vmem:[#allocation5 + $0x2f0] sm:$0xff]   ;;  %v3577_v21 = vld [vmem:[#allocation5 + $0x3e0] sm:$0xff]  }
  0x4c   :  { %2345 = vmatprep.mubr.bf16.mxu1 %v113_v22  ;;  %v3578_v22 = vld [vmem:[#allocation5 + $0x320] sm:$0xff]  }
  0x4d   :  { %3154 = vmatpush3.bf16.msra.mxu0 %v3502_v50  ;;  %v3554_v50 = vld [vmem:[#allocation5 + $0x230] sm:$0xff]  }
  0x4e   :  { %3176 = vmatpush3.bf16.msra.mxu1 %v3503_v51  ;;  %3155 = vmatprep.subr.bf16.mxu0 %v3504_v52  ;;  %v3555_v51 = vld [vmem:[#allocation5 + $0x2b0] sm:$0xff]   ;;  %v3556_v52 = vld [vmem:[#allocation5 + $0x278] sm:$0xff]  }
  0x4f   :  { %3177 = vmatprep.subr.bf16.mxu1 %v3505_v53  ;;  %v3557_v53 = vld [vmem:[#allocation5 + $0x2f8] sm:$0xff]  }
  0x51   :  { %3156 = vmatpush3.bf16.msra.mxu0 %v3506_v54  ;;  %v3558_v54 = vld [vmem:[#allocation5 + $0x238] sm:$0xff]  }
  0x52   :  { %3178 = vmatpush3.bf16.msra.mxu1 %v3507_v55  ;;  %3157 = vmatprep.subr.bf16.mxu0 %v3508_v56  ;;  %v3559_v55 = vld [vmem:[#allocation5 + $0x2b8] sm:$0xff]   ;;  %v51_v56 = vld [vmem:[#allocation2 + $0x48] sm:$0xff] }
  0x53   :  { %3179 = vmatprep.subr.bf16.mxu1 %v3509_v57  ;;  %v53_v57 = vld [vmem:[#allocation2 + $0x58] sm:$0xff] }
  0x55   :  { %3158 = vmatpush3.bf16.msra.mxu0 %v3510_v58  ;;  %v83_v58 = vmax.f32 %v51_v56, 0.0  ;;  %v3600_v56 = vld [vmem:[#allocation5 + $0x450] sm:$0xff]  }
  0x56   :  { %3180 = vmatpush3.bf16.msra.mxu1 %v3511_v59  ;;  %3159 = vmatprep.subr.bf16.mxu0 %v3512_v60  ;;  %v85_v59 = vmax.f32 %v53_v57, 0.0  ;;  %v50_v60 = vld [vmem:[#allocation2 + $0x40] sm:$0xff]  ;;  %v3601_v57 = vld [vmem:[#allocation5 + $0x4d0] sm:$0xff]  }
  0x57   :  { %3181 = vmatprep.subr.bf16.mxu1 %v3513_v61  ;;  %v52_v61 = vld [vmem:[#allocation2 + $0x50] sm:$0xff] }
  0x59   :  { %3160 = vmatpush3.bf16.msra.mxu0 %v3514_v62  ;;  %v82_v62 = vmax.f32 %v50_v60, 0.0  ;;  %v3604_v60 = vld [vmem:[#allocation5 + $0x458] sm:$0xff]  }
  0x5a   :  { %3182 = vmatpush3.bf16.msra.mxu1 %v3515_v63  ;;  %3161 = vmatprep.subr.bf16.mxu0 %v3516_v0  ;;  %v84_v63 = vmax.f32 %v52_v61, 0.0  ;;  %v3560_v0 = vld [vmem:[#allocation5 + $0x340] sm:$0xff]   ;;  %v3605_v61 = vld [vmem:[#allocation5 + $0x4d8] sm:$0xff]  }
  0x5b   :  { %3183 = vmatprep.subr.bf16.mxu1 %v3517_v1  ;;  %v3561_v1 = vld [vmem:[#allocation5 + $0x3c0] sm:$0xff]  }
  0x5d   :  { %3162 = vmatpush3.bf16.msra.mxu0 %v3518_v2  ;;  %v115_v2 = vpack.c.bf16 %v83_v58, %v83_v58  ;;  %v3602_v58 = vld [vmem:[#allocation5 + $0x410] sm:$0xff]  }
  0x5e   :  { %3184 = vmatpush3.bf16.msra.mxu1 %v3519_v3  ;;  %3163 = vmatprep.subr.bf16.mxu0 %v3520_v4  ;;  %v117_v3 = vpack.c.bf16 %v85_v59, %v85_v59  ;;  %v114_v4 = vpack.c.bf16 %v82_v62, %v82_v62  ;;  %v3603_v59 = vld [vmem:[#allocation5 + $0x490] sm:$0xff]   ;;  %v3606_v62 = vld [vmem:[#allocation5 + $0x418] sm:$0xff]  }
  0x5f   :  { %3185 = vmatprep.subr.bf16.mxu1 %v3521_v5  ;;  %v116_v5 = vpack.c.bf16 %v84_v63, %v84_v63  ;;  %v3607_v63 = vld [vmem:[#allocation5 + $0x498] sm:$0xff]  }
  0x61   :  { %3164 = vmatpush3.bf16.msra.mxu0 %v3522_v6  ;;  %v3562_v6 = vld [vmem:[#allocation5 + $0x300] sm:$0xff]  }
  0x62   :  { %3186 = vmatpush3.bf16.msra.mxu1 %v3523_v7  ;;  %3165 = vmatprep.subr.bf16.mxu0 %v3524_v8  ;;  %v3563_v7 = vld [vmem:[#allocation5 + $0x380] sm:$0xff]   ;;  %v3564_v8 = vld [vmem:[#allocation5 + $0x348] sm:$0xff]  }
  0x63   :  { %3187 = vmatprep.subr.bf16.mxu1 %v3525_v9  ;;  %v3565_v9 = vld [vmem:[#allocation5 + $0x3c8] sm:$0xff]  }
  0x65   :  { %3166 = vmatpush3.bf16.msra.mxu0 %v3526_v10  ;;  %v3566_v10 = vld [vmem:[#allocation5 + $0x308] sm:$0xff]  }
  0x66   :  { %3188 = vmatpush3.bf16.msra.mxu1 %v3527_v11  ;;  %3195 = vmatprep.subr.bf16.mxu0 %v3528_v20  ;;  %v3567_v11 = vld [vmem:[#allocation5 + $0x388] sm:$0xff]   ;;  %v3576_v20 = vld [vmem:[#allocation5 + $0x360] sm:$0xff]  }
  0x67   :  { %3217 = vmatprep.subr.bf16.mxu1 %v3529_v25  ;;  %v3581_v25 = vld [vmem:[#allocation5 + $0x3e8] sm:$0xff]  }
  0x68   :  { %2306 = vmatmul.mubr.bf16.vlgmr.msra.gmra.mrb[4].mxu0 %v110_v23  ;;  %v3579_v23 = vld [vmem:[#allocation5 + $0x3a0] sm:$0xff]  }
  0x69   :  { %2346 = vmatmul.mubr.bf16.vlgmr.msra.gmra.mrb[4].mxu1 %v112_v24  ;;  %3196 = vmatpush3.bf16.msra.mxu0 %v3530_v26  ;;  %v3580_v24 = vld [vmem:[#allocation5 + $0x368] sm:$0xff]  }
  0x6a   :  { %3218 = vmatpush3.bf16.msra.mxu1 %v3531_v27  ;;  %3197 = vmatprep.subr.bf16.mxu0 %v3532_v28  ;;  %v3582_v26 = vld [vmem:[#allocation5 + $0x328] sm:$0xff]   ;;  %v3584_v28 = vld [vmem:[#allocation5 + $0x370] sm:$0xff]  }
  0x6b   :  { %3219 = vmatprep.subr.bf16.mxu1 %v3533_v29  ;;  %2385 = vmatprep.mubr.bf16.mxu0 %v115_v2  ;;  %v3583_v27 = vld [vmem:[#allocation5 + $0x3a8] sm:$0xff]   ;;  %v3585_v29 = vld [vmem:[#allocation5 + $0x3f0] sm:$0xff]   ;;  %v3610_v2 = vld [vmem:[#allocation5 + $0x420] sm:$0xff]  }
  0x6c   :  { %2425 = vmatprep.mubr.bf16.mxu1 %v117_v3  ;;  %v3611_v3 = vld [vmem:[#allocation5 + $0x4a0] sm:$0xff]  }
  0x6d   :  { %3198 = vmatpush3.bf16.msra.mxu0 %v3534_v30  ;;  %v3586_v30 = vld [vmem:[#allocation5 + $0x330] sm:$0xff]  }
  0x6e   :  { %3220 = vmatpush3.bf16.msra.mxu1 %v3535_v31  ;;  %3199 = vmatprep.subr.bf16.mxu0 %v3536_v32  ;;  %v3587_v31 = vld [vmem:[#allocation5 + $0x3b0] sm:$0xff]   ;;  %v3588_v32 = vld [vmem:[#allocation5 + $0x378] sm:$0xff]  }
  0x6f   :  { %3221 = vmatprep.subr.bf16.mxu1 %v3537_v33  ;;  %v3589_v33 = vld [vmem:[#allocation5 + $0x3f8] sm:$0xff]  }
  0x71   :  { %3200 = vmatpush3.bf16.msra.mxu0 %v3538_v34  ;;  %v3590_v34 = vld [vmem:[#allocation5 + $0x338] sm:$0xff]  }
  0x72   :  { %3222 = vmatpush3.bf16.msra.mxu1 %v3539_v35  ;;  %3201 = vmatprep.subr.bf16.mxu0 %v3540_v36  ;;  %v3591_v35 = vld [vmem:[#allocation5 + $0x3b8] sm:$0xff]   ;;  %v55_v36 = vld [vmem:[#allocation2 + $0x68] sm:$0xff] }
  0x73   :  { %3223 = vmatprep.subr.bf16.mxu1 %v3541_v37  ;;  %v87_v37 = vmax.f32 %v55_v36, 0.0  ;;  %v3632_v36 = vld [vmem:[#allocation5 + $0x550] sm:$0xff]  }
  0x75   :  { %3202 = vmatpush3.bf16.msra.mxu0 %v3542_v38  ;;  %v57_v38 = vld [vmem:[#allocation2 + $0x78] sm:$0xff] }
  0x76   :  { %3224 = vmatpush3.bf16.msra.mxu1 %v3543_v39  ;;  %3203 = vmatprep.subr.bf16.mxu0 %v3544_v40  ;;  %v54_v39 = vld [vmem:[#allocation2 + $0x60] sm:$0xff]  ;;  %v56_v40 = vld [vmem:[#allocation2 + $0x70] sm:$0xff] }
  0x77   :  { %3225 = vmatprep.subr.bf16.mxu1 %v3545_v41  ;;  %v89_v41 = vmax.f32 %v57_v38, 0.0  ;;  %v3634_v38 = vld [vmem:[#allocation5 + $0x510] sm:$0xff]  }
  0x79   :  { %3204 = vmatpush3.bf16.msra.mxu0 %v3546_v42  ;;  %v86_v42 = vmax.f32 %v54_v39, 0.0  ;;  %v3635_v39 = vld [vmem:[#allocation5 + $0x590] sm:$0xff]  }
  0x7a   :  { %3226 = vmatpush3.bf16.msra.mxu1 %v3547_v43  ;;  %3205 = vmatprep.subr.bf16.mxu0 %v3548_v44  ;;  %v88_v43 = vmax.f32 %v56_v40, 0.0  ;;  %v3592_v44 = vld [vmem:[#allocation5 + $0x440] sm:$0xff]   ;;  %v3636_v40 = vld [vmem:[#allocation5 + $0x558] sm:$0xff]  }
  0x7b   :  { %3227 = vmatprep.subr.bf16.mxu1 %v3549_v45  ;;  %v119_v45 = vpack.c.bf16 %v87_v37, %v87_v37  ;;  %v3633_v37 = vld [vmem:[#allocation5 + $0x5d0] sm:$0xff]  }
  0x7d   :  { %3206 = vmatpush3.bf16.msra.mxu0 %v3550_v46  ;;  %v121_v46 = vpack.c.bf16 %v89_v41, %v89_v41  ;;  %v3637_v41 = vld [vmem:[#allocation5 + $0x5d8] sm:$0xff]  }
  0x7e   :  { %3228 = vmatpush3.bf16.msra.mxu1 %v3551_v47  ;;  %3207 = vmatprep.subr.bf16.mxu0 %v3552_v48  ;;  %v118_v47 = vpack.c.bf16 %v86_v42, %v86_v42  ;;  %v120_v48 = vpack.c.bf16 %v88_v43, %v88_v43  ;;  %v3638_v42 = vld [vmem:[#allocation5 + $0x518] sm:$0xff]  }
  0x7f   :  { %3229 = vmatprep.subr.bf16.mxu1 %v3553_v49  ;;  %v3593_v49 = vld [vmem:[#allocation5 + $0x4c0] sm:$0xff]   ;;  %v3639_v43 = vld [vmem:[#allocation5 + $0x598] sm:$0xff]  }
  0x81   :  { %3208 = vmatpush3.bf16.msra.mxu0 %v3554_v50  ;;  %v3594_v50 = vld [vmem:[#allocation5 + $0x400] sm:$0xff]  }
  0x82   :  { %3230 = vmatpush3.bf16.msra.mxu1 %v3555_v51  ;;  %3209 = vmatprep.subr.bf16.mxu0 %v3556_v52  ;;  %v3595_v51 = vld [vmem:[#allocation5 + $0x480] sm:$0xff]   ;;  %v3596_v52 = vld [vmem:[#allocation5 + $0x448] sm:$0xff]  }
  0x83   :  { %3231 = vmatprep.subr.bf16.mxu1 %v3557_v53  ;;  %v3597_v53 = vld [vmem:[#allocation5 + $0x4c8] sm:$0xff]  }
  0x85   :  { %3210 = vmatpush3.bf16.msra.mxu0 %v3558_v54  ;;  %v3598_v54 = vld [vmem:[#allocation5 + $0x408] sm:$0xff]  }
  0x86   :  { %3232 = vmatpush3.bf16.msra.mxu1 %v3559_v55  ;;  %3239 = vmatprep.subr.bf16.mxu0 %v3560_v0  ;;  %v3599_v55 = vld [vmem:[#allocation5 + $0x488] sm:$0xff]   ;;  %v3608_v0 = vld [vmem:[#allocation5 + $0x460] sm:$0xff]  }
  0x87   :  { %3261 = vmatprep.subr.bf16.mxu1 %v3561_v1  ;;  %v3609_v1 = vld [vmem:[#allocation5 + $0x4e0] sm:$0xff]  }
  0x88   :  { %2386 = vmatmul.mubr.bf16.vlgmr.msra.gmra.mrb[8].mxu0 %v114_v4  ;;  %v3612_v4 = vld [vmem:[#allocation5 + $0x468] sm:$0xff]  }
  0x89   :  { %2426 = vmatmul.mubr.bf16.vlgmr.msra.gmra.mrb[8].mxu1 %v116_v5  ;;  %3240 = vmatpush3.bf16.msra.mxu0 %v3562_v6  ;;  %v3613_v5 = vld [vmem:[#allocation5 + $0x4e8] sm:$0xff]  }
  0x8a   :  { %3262 = vmatpush3.bf16.msra.mxu1 %v3563_v7  ;;  %3241 = vmatprep.subr.bf16.mxu0 %v3564_v8  ;;  %v3614_v6 = vld [vmem:[#allocation5 + $0x428] sm:$0xff]   ;;  %v3616_v8 = vld [vmem:[#allocation5 + $0x470] sm:$0xff]  }
  0x8b   :  { %3263 = vmatprep.subr.bf16.mxu1 %v3565_v9  ;;  %2465 = vmatprep.mubr.bf16.mxu0 %v119_v45  ;;  %v3615_v7 = vld [vmem:[#allocation5 + $0x4a8] sm:$0xff]   ;;  %v3617_v9 = vld [vmem:[#allocation5 + $0x4f0] sm:$0xff]   ;;  %v3641_v45 = vld [vmem:[#allocation5 + $0x5e0] sm:$0xff]  }
  0x8c   :  { %2505 = vmatprep.mubr.bf16.mxu1 %v121_v46  ;;  %v3642_v46 = vld [vmem:[#allocation5 + $0x520] sm:$0xff]  }
  0x8d   :  { %3242 = vmatpush3.bf16.msra.mxu0 %v3566_v10  ;;  %v3618_v10 = vld [vmem:[#allocation5 + $0x430] sm:$0xff]  }
  0x8e   :  { %3264 = vmatpush3.bf16.msra.mxu1 %v3567_v11  ;;  %3243 = vmatprep.subr.bf16.mxu0 %v3568_v12  ;;  %v3619_v11 = vld [vmem:[#allocation5 + $0x4b0] sm:$0xff]   ;;  %v3620_v12 = vld [vmem:[#allocation5 + $0x478] sm:$0xff]  }
  0x8f   :  { %3265 = vmatprep.subr.bf16.mxu1 %v3569_v13  ;;  %v3621_v13 = vld [vmem:[#allocation5 + $0x4f8] sm:$0xff]  }
  0x91   :  { %3244 = vmatpush3.bf16.msra.mxu0 %v3570_v14  ;;  %v3622_v14 = vld [vmem:[#allocation5 + $0x438] sm:$0xff]  }
  0x92   :  { %3266 = vmatpush3.bf16.msra.mxu1 %v3571_v15  ;;  %3245 = vmatprep.subr.bf16.mxu0 %v3572_v16  ;;  %v3623_v15 = vld [vmem:[#allocation5 + $0x4b8] sm:$0xff]   ;;  %v59_v16 = vld [vmem:[#allocation2 + $0x88] sm:$0xff] }
  0x93   :  { %3267 = vmatprep.subr.bf16.mxu1 %v3573_v17  ;;  %v61_v17 = vld [vmem:[#allocation2 + $0x98] sm:$0xff] }
  0x95   :  { %3246 = vmatpush3.bf16.msra.mxu0 %v3574_v18  ;;  %v91_v18 = vmax.f32 %v59_v16, 0.0  ;;  %v3664_v16 = vld [vmem:[#allocation5 + $0x650] sm:$0xff]  }
  0x96   :  { %3268 = vmatpush3.bf16.msra.mxu1 %v3575_v19  ;;  %3247 = vmatprep.subr.bf16.mxu0 %v3576_v20  ;;  %v93_v19 = vmax.f32 %v61_v17, 0.0  ;;  %v58_v20 = vld [vmem:[#allocation2 + $0x80] sm:$0xff]  ;;  %v3665_v17 = vld [vmem:[#allocation5 + $0x6d0] sm:$0xff]  }
  0x97   :  { %3269 = vmatprep.subr.bf16.mxu1 %v3577_v21  ;;  %v60_v21 = vld [vmem:[#allocation2 + $0x90] sm:$0xff] }
  0x99   :  { %3248 = vmatpush3.bf16.msra.mxu0 %v3578_v22  ;;  %v90_v22 = vmax.f32 %v58_v20, 0.0  ;;  %v3668_v20 = vld [vmem:[#allocation5 + $0x658] sm:$0xff]  }
  0x9a   :  { %3270 = vmatpush3.bf16.msra.mxu1 %v3579_v23  ;;  %3249 = vmatprep.subr.bf16.mxu0 %v3580_v24  ;;  %v92_v23 = vmax.f32 %v60_v21, 0.0  ;;  %v3624_v24 = vld [vmem:[#allocation5 + $0x540] sm:$0xff]   ;;  %v3669_v21 = vld [vmem:[#allocation5 + $0x6d8] sm:$0xff]  }
  0x9b   :  { %3271 = vmatprep.subr.bf16.mxu1 %v3581_v25  ;;  %v3625_v25 = vld [vmem:[#allocation5 + $0x5c0] sm:$0xff]  }
  0x9d   :  { %3250 = vmatpush3.bf16.msra.mxu0 %v3582_v26  ;;  %v123_v26 = vpack.c.bf16 %v91_v18, %v91_v18  ;;  %v3666_v18 = vld [vmem:[#allocation5 + $0x610] sm:$0xff]  }
  0x9e   :  { %3272 = vmatpush3.bf16.msra.mxu1 %v3583_v27  ;;  %3251 = vmatprep.subr.bf16.mxu0 %v3584_v28  ;;  %v125_v27 = vpack.c.bf16 %v93_v19, %v93_v19  ;;  %v122_v28 = vpack.c.bf16 %v90_v22, %v90_v22  ;;  %v3667_v19 = vld [vmem:[#allocation5 + $0x690] sm:$0xff]   ;;  %v3670_v22 = vld [vmem:[#allocation5 + $0x618] sm:$0xff]  }
  0x9f   :  { %3273 = vmatprep.subr.bf16.mxu1 %v3585_v29  ;;  %v124_v29 = vpack.c.bf16 %v92_v23, %v92_v23  ;;  %v3671_v23 = vld [vmem:[#allocation5 + $0x698] sm:$0xff]  }
  0xa1   :  { %3252 = vmatpush3.bf16.msra.mxu0 %v3586_v30  ;;  %v3626_v30 = vld [vmem:[#allocation5 + $0x500] sm:$0xff]  }
  0xa2   :  { %3274 = vmatpush3.bf16.msra.mxu1 %v3587_v31  ;;  %3253 = vmatprep.subr.bf16.mxu0 %v3588_v32  ;;  %v3627_v31 = vld [vmem:[#allocation5 + $0x580] sm:$0xff]   ;;  %v3628_v32 = vld [vmem:[#allocation5 + $0x548] sm:$0xff]  }
  0xa3   :  { %3275 = vmatprep.subr.bf16.mxu1 %v3589_v33  ;;  %v3629_v33 = vld [vmem:[#allocation5 + $0x5c8] sm:$0xff]  }
  0xa5   :  { %3254 = vmatpush3.bf16.msra.mxu0 %v3590_v34  ;;  %v3630_v34 = vld [vmem:[#allocation5 + $0x508] sm:$0xff]  }
  0xa6   :  { %3276 = vmatpush3.bf16.msra.mxu1 %v3591_v35  ;;  %3283 = vmatprep.subr.bf16.mxu0 %v3592_v44  ;;  %v3631_v35 = vld [vmem:[#allocation5 + $0x588] sm:$0xff]   ;;  %v3640_v44 = vld [vmem:[#allocation5 + $0x560] sm:$0xff]  }
  0xa7   :  { %3305 = vmatprep.subr.bf16.mxu1 %v3593_v49  ;;  %v3645_v49 = vld [vmem:[#allocation5 + $0x5e8] sm:$0xff]  }
  0xa8   :  { %2466 = vmatmul.mubr.bf16.vlgmr.msra.gmra.mrb[12].mxu0 %v118_v47  ;;  %v3643_v47 = vld [vmem:[#allocation5 + $0x5a0] sm:$0xff]  }
  0xa9   :  { %2506 = vmatmul.mubr.bf16.vlgmr.msra.gmra.mrb[12].mxu1 %v120_v48  ;;  %3284 = vmatpush3.bf16.msra.mxu0 %v3594_v50  ;;  %v3644_v48 = vld [vmem:[#allocation5 + $0x568] sm:$0xff]  }
  0xaa   :  { %3306 = vmatpush3.bf16.msra.mxu1 %v3595_v51  ;;  %3285 = vmatprep.subr.bf16.mxu0 %v3596_v52  ;;  %v3646_v50 = vld [vmem:[#allocation5 + $0x528] sm:$0xff]   ;;  %v3648_v52 = vld [vmem:[#allocation5 + $0x570] sm:$0xff]  }
  0xab   :  { %3307 = vmatprep.subr.bf16.mxu1 %v3597_v53  ;;  %2545 = vmatprep.mubr.bf16.mxu0 %v123_v26  ;;  %v3647_v51 = vld [vmem:[#allocation5 + $0x5a8] sm:$0xff]   ;;  %v3649_v53 = vld [vmem:[#allocation5 + $0x5f0] sm:$0xff]   ;;  %v3674_v26 = vld [vmem:[#allocation5 + $0x620] sm:$0xff]  }
  0xac   :  { %2585 = vmatprep.mubr.bf16.mxu1 %v125_v27  ;;  %v3675_v27 = vld [vmem:[#allocation5 + $0x6a0] sm:$0xff]  }
  0xad   :  { %3286 = vmatpush3.bf16.msra.mxu0 %v3598_v54  ;;  %v3650_v54 = vld [vmem:[#allocation5 + $0x530] sm:$0xff]  }
  0xae   :  { %3308 = vmatpush3.bf16.msra.mxu1 %v3599_v55  ;;  %3287 = vmatprep.subr.bf16.mxu0 %v3600_v56  ;;  %v3651_v55 = vld [vmem:[#allocation5 + $0x5b0] sm:$0xff]   ;;  %v3652_v56 = vld [vmem:[#allocation5 + $0x578] sm:$0xff]  }
  0xaf   :  { %3309 = vmatprep.subr.bf16.mxu1 %v3601_v57  ;;  %v3653_v57 = vld [vmem:[#allocation5 + $0x5f8] sm:$0xff]  }
  0xb1   :  { %3288 = vmatpush3.bf16.msra.mxu0 %v3602_v58  ;;  %v3654_v58 = vld [vmem:[#allocation5 + $0x538] sm:$0xff]  }
  0xb2   :  { %3310 = vmatpush3.bf16.msra.mxu1 %v3603_v59  ;;  %3289 = vmatprep.subr.bf16.mxu0 %v3604_v60  ;;  %v3655_v59 = vld [vmem:[#allocation5 + $0x5b8] sm:$0xff]   ;;  %v63_v60 = vld [vmem:[#allocation2 + $0xa8] sm:$0xff] }
  0xb3   :  { %3311 = vmatprep.subr.bf16.mxu1 %v3605_v61  ;;  %v95_v61 = vmax.f32 %v63_v60, 0.0  ;;  %v3696_v60 = vld [vmem:[#allocation5 + $0x750] sm:$0xff]  }
  0xb5   :  { %3290 = vmatpush3.bf16.msra.mxu0 %v3606_v62  ;;  %v65_v62 = vld [vmem:[#allocation2 + $0xb8] sm:$0xff] }
  0xb6   :  { %3312 = vmatpush3.bf16.msra.mxu1 %v3607_v63  ;;  %3291 = vmatprep.subr.bf16.mxu0 %v3608_v0  ;;  %v62_v63 = vld [vmem:[#allocation2 + $0xa0] sm:$0xff]  ;;  %v64_v0 = vld [vmem:[#allocation2 + $0xb0] sm:$0xff] }
  0xb7   :  { %3313 = vmatprep.subr.bf16.mxu1 %v3609_v1  ;;  %v97_v1 = vmax.f32 %v65_v62, 0.0  ;;  %v3698_v62 = vld [vmem:[#allocation5 + $0x710] sm:$0xff]  }
  0xb9   :  { %3292 = vmatpush3.bf16.msra.mxu0 %v3610_v2  ;;  %v94_v2 = vmax.f32 %v62_v63, 0.0  ;;  %v3699_v63 = vld [vmem:[#allocation5 + $0x790] sm:$0xff]  }
  0xba   :  { %3314 = vmatpush3.bf16.msra.mxu1 %v3611_v3  ;;  %3293 = vmatprep.subr.bf16.mxu0 %v3612_v4  ;;  %v96_v3 = vmax.f32 %v64_v0, 0.0  ;;  %v3656_v4 = vld [vmem:[#allocation5 + $0x640] sm:$0xff]   ;;  %v3700_v0 = vld [vmem:[#allocation5 + $0x758] sm:$0xff]  }
  0xbb   :  { %3315 = vmatprep.subr.bf16.mxu1 %v3613_v5  ;;  %v127_v5 = vpack.c.bf16 %v95_v61, %v95_v61  ;;  %v3697_v61 = vld [vmem:[#allocation5 + $0x7d0] sm:$0xff]  }
  0xbd   :  { %3294 = vmatpush3.bf16.msra.mxu0 %v3614_v6  ;;  %v129_v6 = vpack.c.bf16 %v97_v1, %v97_v1  ;;  %v3701_v1 = vld [vmem:[#allocation5 + $0x7d8] sm:$0xff]  }
  0xbe   :  { %3316 = vmatpush3.bf16.msra.mxu1 %v3615_v7  ;;  %3295 = vmatprep.subr.bf16.mxu0 %v3616_v8  ;;  %v126_v7 = vpack.c.bf16 %v94_v2, %v94_v2  ;;  %v128_v8 = vpack.c.bf16 %v96_v3, %v96_v3  ;;  %v3702_v2 = vld [vmem:[#allocation5 + $0x718] sm:$0xff]  }
  0xbf   :  { %3317 = vmatprep.subr.bf16.mxu1 %v3617_v9  ;;  %v3657_v9 = vld [vmem:[#allocation5 + $0x6c0] sm:$0xff]  }
  0xc1   :  { %3296 = vmatpush3.bf16.msra.mxu0 %v3618_v10  ;;  %v3658_v10 = vld [vmem:[#allocation5 + $0x600] sm:$0xff]  }
  0xc2   :  { %3318 = vmatpush3.bf16.msra.mxu1 %v3619_v11  ;;  %3297 = vmatprep.subr.bf16.mxu0 %v3620_v12  ;;  %v3659_v11 = vld [vmem:[#allocation5 + $0x680] sm:$0xff]   ;;  %v3660_v12 = vld [vmem:[#allocation5 + $0x648] sm:$0xff]  }
  0xc3   :  { %3319 = vmatprep.subr.bf16.mxu1 %v3621_v13  ;;  %v3661_v13 = vld [vmem:[#allocation5 + $0x6c8] sm:$0xff]  }
  0xc5   :  { %3298 = vmatpush3.bf16.msra.mxu0 %v3622_v14  ;;  %v3662_v14 = vld [vmem:[#allocation5 + $0x608] sm:$0xff]  }
  0xc6   :  { %3320 = vmatpush3.bf16.msra.mxu1 %v3623_v15  ;;  %3327 = vmatprep.subr.bf16.mxu0 %v3624_v24  ;;  %v3663_v15 = vld [vmem:[#allocation5 + $0x688] sm:$0xff]   ;;  %v3672_v24 = vld [vmem:[#allocation5 + $0x660] sm:$0xff]  }
  0xc7   :  { %3349 = vmatprep.subr.bf16.mxu1 %v3625_v25  ;;  %v3673_v25 = vld [vmem:[#allocation5 + $0x6e0] sm:$0xff]  }
  0xc8   :  { %2546 = vmatmul.mubr.bf16.vlgmr.msra.gmra.mrb[16].mxu0 %v122_v28  ;;  %v3676_v28 = vld [vmem:[#allocation5 + $0x668] sm:$0xff]  }
  0xc9   :  { %2586 = vmatmul.mubr.bf16.vlgmr.msra.gmra.mrb[16].mxu1 %v124_v29  ;;  %3328 = vmatpush3.bf16.msra.mxu0 %v3626_v30  ;;  %v3677_v29 = vld [vmem:[#allocation5 + $0x6e8] sm:$0xff]  }
  0xca   :  { %3350 = vmatpush3.bf16.msra.mxu1 %v3627_v31  ;;  %3329 = vmatprep.subr.bf16.mxu0 %v3628_v32  ;;  %v3678_v30 = vld [vmem:[#allocation5 + $0x628] sm:$0xff]   ;;  %v3680_v32 = vld [vmem:[#allocation5 + $0x670] sm:$0xff]  }
  0xcb   :  { %3351 = vmatprep.subr.bf16.mxu1 %v3629_v33  ;;  %2625 = vmatprep.mubr.bf16.mxu0 %v127_v5  ;;  %v3679_v31 = vld [vmem:[#allocation5 + $0x6a8] sm:$0xff]   ;;  %v3681_v33 = vld [vmem:[#allocation5 + $0x6f0] sm:$0xff]  }
  0xcc   :  { %2665 = vmatprep.mubr.bf16.mxu1 %v129_v6  ;;  %v3704_v6 = vld [vmem:[#allocation5 + $0x760] sm:$0xff]  }
  0xcd   :  { %3330 = vmatpush3.bf16.msra.mxu0 %v3630_v34  ;;  %v3682_v34 = vld [vmem:[#allocation5 + $0x630] sm:$0xff]  }
  0xce   :  { %3352 = vmatpush3.bf16.msra.mxu1 %v3631_v35  ;;  %3331 = vmatprep.subr.bf16.mxu0 %v3632_v36  ;;  %v3683_v35 = vld [vmem:[#allocation5 + $0x6b0] sm:$0xff]   ;;  %v3684_v36 = vld [vmem:[#allocation5 + $0x678] sm:$0xff]  }
  0xcf   :  { %3353 = vmatprep.subr.bf16.mxu1 %v3633_v37  ;;  %v3685_v37 = vld [vmem:[#allocation5 + $0x6f8] sm:$0xff]  }
  0xd1   :  { %3332 = vmatpush3.bf16.msra.mxu0 %v3634_v38  ;;  %v3686_v38 = vld [vmem:[#allocation5 + $0x638] sm:$0xff]  }
  0xd2   :  { %3354 = vmatpush3.bf16.msra.mxu1 %v3635_v39  ;;  %3333 = vmatprep.subr.bf16.mxu0 %v3636_v40  ;;  %v3687_v39 = vld [vmem:[#allocation5 + $0x6b8] sm:$0xff]   ;;  %v67_v40 = vld [vmem:[#allocation2 + $0xc8] sm:$0xff] }
  0xd3   :  { %3355 = vmatprep.subr.bf16.mxu1 %v3637_v41  ;;  %v69_v41 = vld [vmem:[#allocation2 + $0xd8] sm:$0xff] }
  0xd5   :  { %3334 = vmatpush3.bf16.msra.mxu0 %v3638_v42  ;;  %v99_v42 = vmax.f32 %v67_v40, 0.0 }
  0xd6   :  { %3356 = vmatpush3.bf16.msra.mxu1 %v3639_v43  ;;  %3335 = vmatprep.subr.bf16.mxu0 %v3640_v44  ;;  %v101_v43 = vmax.f32 %v69_v41, 0.0  ;;  %v66_v44 = vld [vmem:[#allocation2 + $0xc0] sm:$0xff] }
  0xd7   :  { %3357 = vmatprep.subr.bf16.mxu1 %v3641_v45  ;;  %v68_v45 = vld [vmem:[#allocation2 + $0xd0] sm:$0xff] }
  0xd9   :  { %3336 = vmatpush3.bf16.msra.mxu0 %v3642_v46  ;;  %v98_v46 = vmax.f32 %v66_v44, 0.0 }
  0xda   :  { %3358 = vmatpush3.bf16.msra.mxu1 %v3643_v47  ;;  %3337 = vmatprep.subr.bf16.mxu0 %v3644_v48  ;;  %v100_v47 = vmax.f32 %v68_v45, 0.0  ;;  %v3688_v48 = vld [vmem:[#allocation5 + $0x740] sm:$0xff]  }
  0xdb   :  { %3359 = vmatprep.subr.bf16.mxu1 %v3645_v49  ;;  %v3689_v49 = vld [vmem:[#allocation5 + $0x7c0] sm:$0xff]  }
  0xdd   :  { %3338 = vmatpush3.bf16.msra.mxu0 %v3646_v50  ;;  %v131_v50 = vpack.c.bf16 %v99_v42, %v99_v42 }
  0xde   :  { %3360 = vmatpush3.bf16.msra.mxu1 %v3647_v51  ;;  %3339 = vmatprep.subr.bf16.mxu0 %v3648_v52  ;;  %v133_v51 = vpack.c.bf16 %v101_v43, %v101_v43  ;;  %v130_v52 = vpack.c.bf16 %v98_v46, %v98_v46 }
  0xdf   :  { %3361 = vmatprep.subr.bf16.mxu1 %v3649_v53  ;;  %v132_v53 = vpack.c.bf16 %v100_v47, %v100_v47 }
  0xe1   :  { %3340 = vmatpush3.bf16.msra.mxu0 %v3650_v54  ;;  %v3690_v54 = vld [vmem:[#allocation5 + $0x700] sm:$0xff]  }
  0xe2   :  { %3362 = vmatpush3.bf16.msra.mxu1 %v3651_v55  ;;  %3341 = vmatprep.subr.bf16.mxu0 %v3652_v56  ;;  %v3691_v55 = vld [vmem:[#allocation5 + $0x780] sm:$0xff]   ;;  %v3692_v56 = vld [vmem:[#allocation5 + $0x748] sm:$0xff]  }
  0xe3   :  { %3363 = vmatprep.subr.bf16.mxu1 %v3653_v57  ;;  %v3693_v57 = vld [vmem:[#allocation5 + $0x7c8] sm:$0xff]  }
  0xe5   :  { %3342 = vmatpush3.bf16.msra.mxu0 %v3654_v58  ;;  %v3694_v58 = vld [vmem:[#allocation5 + $0x708] sm:$0xff]  }
  0xe6   :  { %3364 = vmatpush3.bf16.msra.mxu1 %v3655_v59  ;;  %3371 = vmatprep.subr.bf16.mxu0 %v3656_v4  ;;  %v3695_v59 = vld [vmem:[#allocation5 + $0x788] sm:$0xff]   ;;  %v3703_v4 = vld [vmem:[#allocation5 + $0x798] sm:$0xff]  }
  0xe7   :  { %3393 = vmatprep.subr.bf16.mxu1 %v3657_v9 }
  0xe8   :  { %2626 = vmatmul.mubr.bf16.vlgmr.msra.gmra.mrb[20].mxu0 %v126_v7 }
  0xe9   :  { %2666 = vmatmul.mubr.bf16.vlgmr.msra.gmra.mrb[20].mxu1 %v128_v8  ;;  %3372 = vmatpush3.bf16.msra.mxu0 %v3658_v10  ;;  %v3705_v8 = vld [vmem:[#allocation5 + $0x7e0] sm:$0xff]  }
  0xea   :  { %3394 = vmatpush3.bf16.msra.mxu1 %v3659_v11  ;;  %3373 = vmatprep.subr.bf16.mxu0 %v3660_v12  ;;  %v3706_v11 = vld [vmem:[#allocation5 + $0x720] sm:$0xff]  }
  0xeb   :  { %3395 = vmatprep.subr.bf16.mxu1 %v3661_v13  ;;  %2705 = vmatprep.mubr.bf16.mxu0 %v131_v50 }
  0xec   :  { %2745 = vmatprep.mubr.bf16.mxu1 %v133_v51 }
  0xed   :  { %3374 = vmatpush3.bf16.msra.mxu0 %v3662_v14  ;;  %v3707_v14 = vld [vmem:[#allocation5 + $0x7a0] sm:$0xff]  }
  0xee   :  { %3396 = vmatpush3.bf16.msra.mxu1 %v3663_v15  ;;  %3375 = vmatprep.subr.bf16.mxu0 %v3664_v16  ;;  %v2850_v15 = vld [vmem:[%s3865_s2] ss:$0 sm:$0xff]  ;;  %s3796_s2 = smov [#allocation7]  }
  0xef   :  { %3397 = vmatprep.subr.bf16.mxu1 %v3665_v17  ;;  %s2840_s11 = sshll.u32 %s3796_s2, 4  ;;  %s2841_s11 = int_to_ptr.vmem [resolvable:$true] %s2840_s11 }
  0xf0   :  { %s3764_s12 = scalar_lea.vmem %s2841_s11, 128  ;;  %p3769_p3 = scmp.lt.s32.totalorder %s2841_s11, %s2841_s11 }
  0xf1   :  { %3376 = vmatpush3.bf16.msra.mxu0 %v3666_v18  ;;  %v3708_v18 = vld [vmem:[#allocation5 + $0x768] sm:$0xff]   ;;  %p3765_p2 = scmp.ne.s32.totalorder %s2841_s11, %s3764_s12  ;;  %p3770_p4 = scmp.lt.s32.totalorder %s3764_s12, %s3764_s12 }
  0xf2   :  { %3398 = vmatpush3.bf16.msra.mxu1 %v3667_v19  ;;  %3377 = vmatprep.subr.bf16.mxu0 %v3668_v20  ;;  %v3709_v20 = vld [vmem:[#allocation5 + $0x7e8] sm:$0xff]  }
  0xf3   :  { %3399 = vmatprep.subr.bf16.mxu1 %v3669_v21  ;;  %p3771_p5 = por %p3770_p4, %p3769_p3 }
  0xf5   :  { %3378 = vmatpush3.bf16.msra.mxu0 %v3670_v22  ;;  %p3772_p6 = pnand %p3771_p5, %p3765_p2 }
  0xf6   :  { %3400 = vmatpush3.bf16.msra.mxu1 %v3671_v23  ;;  %3379 = vmatprep.subr.bf16.mxu0 %v3672_v24  ;;  %v3710_v23 = vld [vmem:[#allocation5 + $0x728] sm:$0xff]  }
  0xf7   :  { %3401 = vmatprep.subr.bf16.mxu1 %v3673_v25  ;;  %v3711_v24 = vld [vmem:[#allocation5 + $0x7a8] sm:$0xff]   ;;  %v3712_v25 = vld [vmem:[#allocation5 + $0x770] sm:$0xff]  }
  0xf9   :  { %3380 = vmatpush3.bf16.msra.mxu0 %v3674_v26  ;;  %v3713_v26 = vld [vmem:[#allocation5 + $0x7f0] sm:$0xff]  }
  0xfa   :  { %3402 = vmatpush3.bf16.msra.mxu1 %v3675_v27  ;;  %3381 = vmatprep.subr.bf16.mxu0 %v3676_v28  ;;  %v3714_v27 = vld [vmem:[#allocation5 + $0x730] sm:$0xff]  }
  0xfb   :  { %3403 = vmatprep.subr.bf16.mxu1 %v3677_v29  ;;  %v3715_v28 = vld [vmem:[#allocation5 + $0x7b0] sm:$0xff]   ;;  %v3716_v29 = vld [vmem:[#allocation5 + $0x778] sm:$0xff]  }
  0xfd   :  { %3382 = vmatpush3.bf16.msra.mxu0 %v3678_v30  ;;  %v3717_v30 = vld [vmem:[#allocation5 + $0x7f8] sm:$0xff]  }
  0xfe   :  { %3404 = vmatpush3.bf16.msra.mxu1 %v3679_v31  ;;  %3383 = vmatprep.subr.bf16.mxu0 %v3680_v32  ;;  %v3718_v31 = vld [vmem:[#allocation5 + $0x738] sm:$0xff]  }
  0xff   :  { %3405 = vmatprep.subr.bf16.mxu1 %v3681_v33  ;;  %v3719_v32 = vld [vmem:[#allocation5 + $0x7b8] sm:$0xff]   ;;  %v71_v33 = vld [vmem:[#allocation2 + $0xe8] sm:$0xff] }
 0x101   :  { %3384 = vmatpush3.bf16.msra.mxu0 %v3682_v34  ;;  %v73_v34 = vld [vmem:[#allocation2 + $0xf8] sm:$0xff] }
 0x102   :  { %3406 = vmatpush3.bf16.msra.mxu1 %v3683_v35  ;;  %3385 = vmatprep.subr.bf16.mxu0 %v3684_v36  ;;  %v70_v35 = vld [vmem:[#allocation2 + $0xe0] sm:$0xff]  ;;  %v103_v36 = vmax.f32 %v71_v33, 0.0 }
 0x103   :  { %3407 = vmatprep.subr.bf16.mxu1 %v3685_v37  ;;  %v105_v37 = vmax.f32 %v73_v34, 0.0 }
 0x104   :  { %v135_v41 = vpack.c.bf16 %v103_v36, %v103_v36 }
 0x105   :  { %3386 = vmatpush3.bf16.msra.mxu0 %v3686_v38  ;;  %v102_v38 = vmax.f32 %v70_v35, 0.0  ;;  %v137_v42 = vpack.c.bf16 %v105_v37, %v105_v37 }
 0x106   :  { %3408 = vmatpush3.bf16.msra.mxu1 %v3687_v39  ;;  %3415 = vmatprep.subr.bf16.mxu0 %v3688_v48  ;;  %v72_v39 = vld [vmem:[#allocation2 + $0xf0] sm:$0xff] }
 0x107   :  { %3437 = vmatprep.subr.bf16.mxu1 %v3689_v49  ;;  %v104_v40 = vmax.f32 %v72_v39, 0.0  ;;  %v134_v43 = vpack.c.bf16 %v102_v38, %v102_v38 }
 0x108   :  { %2706 = vmatmul.mubr.bf16.vlgmr.msra.gmra.mrb[24].mxu0 %v130_v52 }
 0x109   :  { %2746 = vmatmul.mubr.bf16.vlgmr.msra.gmra.mrb[24].mxu1 %v132_v53  ;;  %3416 = vmatpush3.bf16.msra.mxu0 %v3690_v54  ;;  %v136_v44 = vpack.c.bf16 %v104_v40, %v104_v40 }
 0x10a   :  { %3438 = vmatpush3.bf16.msra.mxu1 %v3691_v55  ;;  %3417 = vmatprep.subr.bf16.mxu0 %v3692_v56 }
 0x10b   :  { %3439 = vmatprep.subr.bf16.mxu1 %v3693_v57  ;;  %2785 = vmatprep.mubr.bf16.mxu0 %v135_v41 }
 0x10c   :  { %2825 = vmatprep.mubr.bf16.mxu1 %v137_v42 }
 0x10d   :  { %3418 = vmatpush3.bf16.msra.mxu0 %v3694_v58 }
 0x10e   :  { %3440 = vmatpush3.bf16.msra.mxu1 %v3695_v59  ;;  %3419 = vmatprep.subr.bf16.mxu0 %v3696_v60 }
 0x10f   :  { %3441 = vmatprep.subr.bf16.mxu1 %v3697_v61 }
 0x111   :  { %3420 = vmatpush3.bf16.msra.mxu0 %v3698_v62 }
 0x112   :  { %3442 = vmatpush3.bf16.msra.mxu1 %v3699_v63  ;;  %3421 = vmatprep.subr.bf16.mxu0 %v3700_v0 }
 0x113   :  { %3443 = vmatprep.subr.bf16.mxu1 %v3701_v1 }
 0x115   :  { %3422 = vmatpush3.bf16.msra.mxu0 %v3702_v2 }
 0x116   :  { %3444 = vmatpush3.bf16.msra.mxu1 %v3703_v4  ;;  %3423 = vmatprep.subr.bf16.mxu0 %v3704_v6 }
 0x117   :  { %3445 = vmatprep.subr.bf16.mxu1 %v3705_v8 }
 0x119   :  { %3424 = vmatpush3.bf16.msra.mxu0 %v3706_v11 }
 0x11a   :  { %3446 = vmatpush3.bf16.msra.mxu1 %v3707_v14  ;;  %3425 = vmatprep.subr.bf16.mxu0 %v3708_v18 }
 0x11b   :  { %v3123_v3 = vpop.f32.mrb[0].mxu0  ;;  %3447 = vmatprep.subr.bf16.mxu1 %v3709_v20 }
 0x11c   :  { %v3145_v5 = vpop.f32.mrb[0].mxu1  ;;  %v3124_v7 = vpop.f32.mrb[1].mxu0 }
 0x11d   :  { %v3125_v9 = vadd.f32 %v3124_v7, %v3123_v3  ;;  %v3146_v10 = vpop.f32.mrb[1].mxu1  ;;  %v3126_v13 = vpop.f32.mrb[2].mxu0  ;;  %3426 = vmatpush3.bf16.msra.mxu0 %v3710_v23 }
 0x11e   :  { %v3147_v12 = vadd.f32 %v3146_v10, %v3145_v5  ;;  %v3148_v16 = vpop.f32.mrb[2].mxu1  ;;  %v3127_v19 = vpop.f32.mrb[3].mxu0  ;;  %3448 = vmatpush3.bf16.msra.mxu1 %v3711_v24  ;;  %3427 = vmatprep.subr.bf16.mxu0 %v3712_v25 }
 0x11f   :  { %v2228_v17 = vadd.f32 %v3125_v9, %v2850_v15  ;;  %v3149_v21 = vpop.f32.mrb[3].mxu1  ;;  %3449 = vmatprep.subr.bf16.mxu1 %v3713_v26 }
 0x121   :  { %v2268_v22 = vadd.f32 %v3147_v12, %v2228_v17  ;;  %3428 = vmatpush3.bf16.msra.mxu0 %v3714_v27 }
 0x122   :  { %3450 = vmatpush3.bf16.msra.mxu1 %v3715_v28  ;;  %3429 = vmatprep.subr.bf16.mxu0 %v3716_v29 }
 0x123   :  { %3451 = vmatprep.subr.bf16.mxu1 %v3717_v30 }
 0x125   :  { %3430 = vmatpush3.bf16.msra.mxu0 %v3718_v31 }
 0x126   :  { %3452 = vmatpush3.bf16.msra.mxu1 %v3719_v32 }
 0x128   :  { %2786 = vmatmul.mubr.bf16.vlgmr.msra.gmra.mrb[28].mxu0 %v134_v43 }
 0x129   :  { %2826 = vmatmul.mubr.bf16.vlgmr.msra.gmra.mrb[28].mxu1 %v136_v44 }
 0x13b   :  { %v3167_v45 = vpop.f32.mrb[4].mxu0 }
 0x13c   :  { %v3189_v46 = vpop.f32.mrb[4].mxu1  ;;  %v3168_v47 = vpop.f32.mrb[5].mxu0 }
 0x13d   :  { %v3169_v48 = vadd.f32 %v3168_v47, %v3167_v45  ;;  %v3190_v49 = vpop.f32.mrb[5].mxu1  ;;  %v3170_v50 = vpop.f32.mrb[6].mxu0 }
 0x13e   :  { %v3191_v51 = vadd.f32 %v3190_v49, %v3189_v46  ;;  %v3192_v52 = vpop.f32.mrb[6].mxu1  ;;  %v3171_v53 = vpop.f32.mrb[7].mxu0 }
 0x13f   :  { %v2308_v54 = vadd.f32 %v3169_v48, %v2268_v22  ;;  %v3193_v55 = vpop.f32.mrb[7].mxu1 }
 0x141   :  { %v2348_v56 = vadd.f32 %v3191_v51, %v2308_v54 }
 0x15b   :  { %v3211_v57 = vpop.f32.mrb[8].mxu0 }
 0x15c   :  { %v3233_v58 = vpop.f32.mrb[8].mxu1  ;;  %v3212_v59 = vpop.f32.mrb[9].mxu0 }
 0x15d   :  { %v3234_v60 = vpop.f32.mrb[9].mxu1  ;;  %v3213_v61 = vadd.f32 %v3212_v59, %v3211_v57  ;;  %v3214_v63 = vpop.f32.mrb[10].mxu0 }
 0x15e   :  { %v3235_v62 = vadd.f32 %v3234_v60, %v3233_v58  ;;  %v3236_v0 = vpop.f32.mrb[10].mxu1  ;;  %v3215_v1 = vpop.f32.mrb[11].mxu0 }
 0x15f   :  { %v3237_v2 = vpop.f32.mrb[11].mxu1  ;;  %v2388_v3 = vadd.f32 %v3213_v61, %v2348_v56 }
 0x161   :  { %v2428_v4 = vadd.f32 %v3235_v62, %v2388_v3 }
 0x17b   :  { %v3255_v5 = vpop.f32.mrb[12].mxu0 }
 0x17c   :  { %v3277_v6 = vpop.f32.mrb[12].mxu1  ;;  %v3256_v7 = vpop.f32.mrb[13].mxu0 }
 0x17d   :  { %v3257_v8 = vadd.f32 %v3256_v7, %v3255_v5  ;;  %v3278_v9 = vpop.f32.mrb[13].mxu1  ;;  %v3258_v10 = vpop.f32.mrb[14].mxu0 }
 0x17e   :  { %v3279_v11 = vadd.f32 %v3278_v9, %v3277_v6  ;;  %v3280_v12 = vpop.f32.mrb[14].mxu1  ;;  %v3259_v13 = vpop.f32.mrb[15].mxu0 }
 0x17f   :  { %v2468_v14 = vadd.f32 %v3257_v8, %v2428_v4  ;;  %v3281_v15 = vpop.f32.mrb[15].mxu1 }
 0x181   :  { %v2508_v16 = vadd.f32 %v3279_v11, %v2468_v14 }
 0x19b   :  { %v3299_v17 = vpop.f32.mrb[16].mxu0 }
 0x19c   :  { %v3321_v18 = vpop.f32.mrb[16].mxu1  ;;  %v3300_v19 = vpop.f32.mrb[17].mxu0 }
 0x19d   :  { %v3322_v20 = vpop.f32.mrb[17].mxu1  ;;  %v3301_v21 = vadd.f32 %v3300_v19, %v3299_v17  ;;  %v3302_v23 = vpop.f32.mrb[18].mxu0 }
 0x19e   :  { %v3323_v22 = vadd.f32 %v3322_v20, %v3321_v18  ;;  %v3324_v24 = vpop.f32.mrb[18].mxu1  ;;  %v3303_v25 = vpop.f32.mrb[19].mxu0 }
 0x19f   :  { %v3325_v26 = vpop.f32.mrb[19].mxu1  ;;  %v2548_v27 = vadd.f32 %v3301_v21, %v2508_v16 }
 0x1a1   :  { %v2588_v28 = vadd.f32 %v3323_v22, %v2548_v27 }
 0x1bb   :  { %v3343_v29 = vpop.f32.mrb[20].mxu0 }
 0x1bc   :  { %v3365_v30 = vpop.f32.mrb[20].mxu1  ;;  %v3344_v31 = vpop.f32.mrb[21].mxu0 }
 0x1bd   :  { %v3345_v32 = vadd.f32 %v3344_v31, %v3343_v29  ;;  %v3366_v33 = vpop.f32.mrb[21].mxu1  ;;  %v3346_v34 = vpop.f32.mrb[22].mxu0 }
 0x1be   :  { %v3367_v35 = vadd.f32 %v3366_v33, %v3365_v30  ;;  %v3368_v36 = vpop.f32.mrb[22].mxu1  ;;  %v3347_v37 = vpop.f32.mrb[23].mxu0 }
 0x1bf   :  { %v2628_v38 = vadd.f32 %v3345_v32, %v2588_v28  ;;  %v3369_v39 = vpop.f32.mrb[23].mxu1 }
 0x1c1   :  { %v2668_v40 = vadd.f32 %v3367_v35, %v2628_v38 }
 0x1db   :  { %v3387_v41 = vpop.f32.mrb[24].mxu0 }
 0x1dc   :  { %v3409_v42 = vpop.f32.mrb[24].mxu1  ;;  %v3388_v43 = vpop.f32.mrb[25].mxu0 }
 0x1dd   :  { %v3410_v44 = vpop.f32.mrb[25].mxu1  ;;  %v3389_v45 = vadd.f32 %v3388_v43, %v3387_v41  ;;  %v3390_v47 = vpop.f32.mrb[26].mxu0 }
 0x1de   :  { %v3411_v46 = vadd.f32 %v3410_v44, %v3409_v42  ;;  %v3412_v48 = vpop.f32.mrb[26].mxu1  ;;  %v3391_v49 = vpop.f32.mrb[27].mxu0 }
 0x1df   :  { %v3413_v50 = vpop.f32.mrb[27].mxu1  ;;  %v2708_v51 = vadd.f32 %v3389_v45, %v2668_v40 }
 0x1e1   :  { %v2748_v52 = vadd.f32 %v3411_v46, %v2708_v51 }
 0x1fb   :  { %v3431_v53 = vpop.f32.mrb[28].mxu0 }
 0x1fc   :  { %v3453_v54 = vpop.f32.mrb[28].mxu1  ;;  %v3432_v55 = vpop.f32.mrb[29].mxu0 }
 0x1fd   :  { %v3454_v56 = vpop.f32.mrb[29].mxu1  ;;  %v3433_v57 = vadd.f32 %v3432_v55, %v3431_v53  ;;  %v3434_v59 = vpop.f32.mrb[30].mxu0 }
 0x1fe   :  { %v3455_v58 = vadd.f32 %v3454_v56, %v3453_v54  ;;  %v3456_v60 = vpop.f32.mrb[30].mxu1  ;;  %v3435_v61 = vpop.f32.mrb[31].mxu0 }
 0x1ff   :  { %v3457_v62 = vpop.f32.mrb[31].mxu1  ;;  %v2788_v63 = vadd.f32 %v3433_v57, %v2748_v52 }
 0x201   :  { %v2828_v0 = vadd.f32 %v3455_v58, %v2788_v63 }
 0x203   :  { %2833 = vst [vmem:[#allocation7] sm:$0xff] %v2828_v0 }
 0x204   :  { %3775 = shalt.err (!%p3772_p6)
}
 0x205   :  { %s3776_s15 = scalar_lea.hbm %s3866_s3, 128 }
 0x206   :  { %p3777_p7 = scmp.ne.s32.totalorder %s3866_s3, %s3776_s15  ;;  %p3780_p8 = scmp.lt.u32.totalorder %s3776_s15, %s3866_s3 }
 0x208   :  { %p3782_p9 = pnand %p3780_p8, %p3777_p7 }
 0x20a   :  { %3785 = shalt.err (!%p3782_p9)
}
 0x20b   :  { %2843 = dma.vmem_to_hbm [thread:$0]  %s2841_s11, 128, %s3866_s3, [#allocation4]  }
 0x20c   :  { %3790 = dma.done.wait [#allocation4], 128  }
 0x20d   :  { %3791 = vsyncadd [#allocation4], 4294967168 }
 0x20e   :  { %2847 = vsyncpa [#allocation3], 1 }
 0x20f   :  { %2848 = vsyncpa [#allocation6], 1 }
 0x210   :  { %2849 = vsyncpa [#allocation4], 1 }

</bundles_post_ra>
